<compile_context>
chip_gen: v6e
topology: v6e:2x2x1
jax: 0.10.0
libtpu: 0.0.40
codegen_flags: <defaults>
</compile_context>

<pallas_src>
import functools

import jax
import jax.numpy as jnp
from jax.experimental import pallas as pl
from jax.experimental.pallas import tpu as pltpu


def _round_up(x, m):
    return ((x + m - 1) // m) * m


def qnet_kernel(xa_ref, wsa_ref, bsa_ref, wc_ref, bc_ref, wo_ref, bo_ref,
                q_ref):
    # xa_ref: (D_IN, B_TILE) f32 tile, batch on lanes.
    xa = xa_ref[...].astype(jnp.bfloat16)

    # h = relu(W_sa @ xa + b_sa)   (128, B_TILE)
    #   == concat([relu(fc_s(x)), relu(fc_a(a))], feature axis) transposed.
    h = jnp.dot(wsa_ref[...], xa, preferred_element_type=jnp.float32)
    h = jnp.maximum(h + bsa_ref[...], 0.0)

    # hc = relu(Wc @ h + bc)       (32, B_TILE)   -- fc_cat
    hc = jnp.dot(wc_ref[...], h.astype(jnp.bfloat16),
                 preferred_element_type=jnp.float32)
    hc = jnp.maximum(hc + bc_ref[...], 0.0)

    # q = wo . hc + bo             (1, B_TILE)    -- fc_out off the MXU:
    # VPU multiply + sublane reduce; output stays lane-dense.
    q = jnp.sum(hc * wo_ref[...], axis=0, keepdims=True) + bo_ref[...]
    q_ref[...] = q


@functools.partial(jax.jit, static_argnames=("b_tile",))
def qnet_forward(x, a, params, *, b_tile=2048):
    """x: (B, in_dim) f32, a: (B, out_dim) f32 -> q: (B, 1) f32."""
    (ws, bs, wa, ba, wc, bc, wo, bo) = params   # torch layout: (out, in), (out,)
    B, in_dim = x.shape
    out_dim = a.shape[1]
    d_in = in_dim + out_dim
    h1 = ws.shape[0]            # 64
    h2 = wa.shape[0]            # 64
    h_cat = h1 + h2             # 128
    h_mid = wc.shape[0]         # 32

    # --- build fused operands (wrapper-side layout plumbing, no compute) ----
    # Block-diagonal first-layer weight: (128, d_in), bf16 for the MXU.
    w_sa = jnp.zeros((h_cat, d_in), jnp.float32)
    w_sa = w_sa.at[:h1, :in_dim].set(ws)
    w_sa = w_sa.at[h1:, in_dim:].set(wa)
    w_sa = w_sa.astype(jnp.bfloat16)
    b_sa = jnp.concatenate([bs, ba]).reshape(h_cat, 1).astype(jnp.float32)

    wc_b = wc.astype(jnp.bfloat16)                       # (32, 128)
    bc_c = bc.reshape(h_mid, 1).astype(jnp.float32)      # (32, 1)
    wo_c = wo.reshape(h_mid, 1).astype(jnp.float32)      # (32, 1)  column
    bo_c = bo.reshape(1, 1).astype(jnp.float32)          # (1, 1)

    # Batch-in-lanes input: xa^T = (d_in, B_pad), zero-padded to a tile multiple.
    b_tile = min(b_tile, _round_up(B, 128))
    b_pad = _round_up(B, b_tile)
    xa = jnp.concatenate([x, a], axis=1).astype(jnp.float32)      # (B, d_in)
    xa = jnp.pad(xa, ((0, b_pad - B), (0, 0)))
    xa_t = xa.T                                                   # (d_in, b_pad)

    num_tiles = b_pad // b_tile
    const = lambda i: (0, 0)

    q_t = pl.pallas_call(
        qnet_kernel,
        out_shape=jax.ShapeDtypeStruct((1, b_pad), jnp.float32),
        grid=(num_tiles,),
        in_specs=[
            pl.BlockSpec((d_in, b_tile), lambda i: (0, i)),   # xa^T tile
            pl.BlockSpec((h_cat, d_in), const),               # W_sa (bf16)
            pl.BlockSpec((h_cat, 1), const),                  # b_sa
            pl.BlockSpec((h_mid, h_cat), const),              # Wc   (bf16)
            pl.BlockSpec((h_mid, 1), const),                  # bc
            pl.BlockSpec((h_mid, 1), const),                  # wo column
            pl.BlockSpec((1, 1), const),                      # bo
        ],
        out_specs=pl.BlockSpec((1, b_tile), lambda i: (0, i)),
        compiler_params=pltpu.CompilerParams(
            dimension_semantics=("parallel",),
            vmem_limit_bytes=32 * 1024 * 1024,
        ),
    )(xa_t, w_sa, b_sa, wc_b, bc_c, wo_c, bo_c)

    return q_t[:, :B].T                                           # (B, 1)


def init_params(key, in_dim=2, out_dim=1):
    """Deterministic init mirroring the nn.Linear shapes (torch layout)."""
    def linear(k, fan_in, fan_out):
        kw, kb = jax.random.split(k)
        bound = 1.0 / jnp.sqrt(fan_in)
        w = jax.random.uniform(kw, (fan_out, fan_in), jnp.float32, -bound, bound)
        b = jax.random.uniform(kb, (fan_out,), jnp.float32, -bound, bound)
        return w, b

    k1, k2, k3, k4 = jax.random.split(key, 4)
    ws, bs = linear(k1, in_dim, 64)     # fc_s
    wa, ba = linear(k2, out_dim, 64)    # fc_a
    wc, bc = linear(k3, 128, 32)        # fc_cat
    wo, bo = linear(k4, 32, 1)          # fc_out
    return (ws, bs, wa, ba, wc, bc, wo, bo)


def qnet_reference(x, a, params):
    """Pure-JAX f32 reference of QNet.forward."""
    (ws, bs, wa, ba, wc, bc, wo, bo) = params
    h1 = jax.nn.relu(x @ ws.T + bs)
    h2 = jax.nn.relu(a @ wa.T + ba)
    cat = jnp.concatenate([h1, h2], axis=1)
    q = jax.nn.relu(cat @ wc.T + bc)
    return q @ wo.T + bo


if __name__ == "__main__":
    key = jax.random.PRNGKey(0)
    kx, ka, kp = jax.random.split(key, 3)

    in_dim, out_dim = 2, 1
    params = init_params(kp, in_dim=in_dim, out_dim=out_dim)

    # Small batch (single tile).
    B = 8
    x = jax.random.normal(kx, (B, in_dim), jnp.float32)
    a = jax.random.normal(ka, (B, out_dim), jnp.float32)
    q = jax.block_until_ready(qnet_forward(x, a, params))
    q_ref = qnet_reference(x, a, params)
    assert q.shape == (B, 1), q.shape
    assert jnp.allclose(q, q_ref, atol=2e-2, rtol=2e-2), (q, q_ref)

    # Larger batch exercising a multi-step grid with padding.
    B2 = 300
    kx2, ka2 = jax.random.split(kx)
    x2 = jax.random.normal(kx2, (B2, in_dim), jnp.float32)
    a2 = jax.random.normal(ka2, (B2, out_dim), jnp.float32)
    q2 = jax.block_until_ready(qnet_forward(x2, a2, params, b_tile=128))
    q2_ref = qnet_reference(x2, a2, params)
    assert q2.shape == (B2, 1), q2.shape
    assert jnp.allclose(q2, q2_ref, atol=2e-2, rtol=2e-2)

    print("KERNEL_OK")
</pallas_src>

<mosaic_0001>
module attributes {stable_mosaic.version = 11 : i64} {
  func.func @qnet_kernel(%arg0: i32, %arg1: memref<3x128xf32, #tpu.memory_space<vmem>>, %arg2: memref<128x3xbf16, #tpu.memory_space<vmem>>, %arg3: memref<128x1xf32, #tpu.memory_space<vmem>>, %arg4: memref<32x128xbf16, #tpu.memory_space<vmem>>, %arg5: memref<32x1xf32, #tpu.memory_space<vmem>>, %arg6: memref<32x1xf32, #tpu.memory_space<vmem>>, %arg7: memref<1x1xf32, #tpu.memory_space<vmem>>, %arg8: memref<1x128xf32, #tpu.memory_space<vmem>>) attributes {dimension_semantics = [#tpu.dimension_semantics<parallel>], iteration_bounds = array<i64: 1>, scalar_prefetch = 0 : i64, scratch_operands = 0 : i64, tpu.core_type = #tpu.core_type<tc>, window_params = [{transform_indices = @transform_0, window_bounds = array<i64: 3, 128>}, {pipeline_mode = #tpu.pipeline_mode<synchronous>, transform_indices = @transform_1, window_bounds = array<i64: 128, 3>}, {pipeline_mode = #tpu.pipeline_mode<synchronous>, transform_indices = @transform_2, window_bounds = array<i64: 128, 1>}, {pipeline_mode = #tpu.pipeline_mode<synchronous>, transform_indices = @transform_3, window_bounds = array<i64: 32, 128>}, {pipeline_mode = #tpu.pipeline_mode<synchronous>, transform_indices = @transform_4, window_bounds = array<i64: 32, 1>}, {pipeline_mode = #tpu.pipeline_mode<synchronous>, transform_indices = @transform_5, window_bounds = array<i64: 32, 1>}, {pipeline_mode = #tpu.pipeline_mode<synchronous>, transform_indices = @transform_6, window_bounds = array<i64: 1, 1>}, {transform_indices = @transform_7, window_bounds = array<i64: 1, 128>}]} {
    %c0 = arith.constant 0 : index
    %c0_0 = arith.constant 0 : index
    %0 = vector.load %arg1[%c0, %c0_0] : memref<3x128xf32, #tpu.memory_space<vmem>>, vector<3x128xf32>
    %1 = arith.truncf %0 : vector<3x128xf32> to vector<3x128xbf16>
    %c0_1 = arith.constant 0 : index
    %c0_2 = arith.constant 0 : index
    %2 = vector.load %arg2[%c0_1, %c0_2] : memref<128x3xbf16, #tpu.memory_space<vmem>>, vector<128x3xbf16>
    %cst = arith.constant dense<0.000000e+00> : vector<128x128xf32>
    %3 = tpu.matmul %2, %1, %cst {dimension_numbers = #tpu.dot_dimension_numbers<[1], [0], [0], [1], [0, 0, 1, 1], [], []>} : vector<128x3xbf16>, vector<3x128xbf16>, vector<128x128xf32> -> vector<128x128xf32>
    %c0_3 = arith.constant 0 : index
    %c0_4 = arith.constant 0 : index
    %4 = vector.load %arg3[%c0_3, %c0_4] : memref<128x1xf32, #tpu.memory_space<vmem>>, vector<128x1xf32>
    %5 = vector.broadcast %4 : vector<128x1xf32> to vector<128x128xf32>
    %6 = arith.addf %3, %5 : vector<128x128xf32>
    %cst_5 = arith.constant 0.000000e+00 : f32
    %7 = vector.broadcast %cst_5 : f32 to vector<128x128xf32>
    %8 = arith.maximumf %6, %7 : vector<128x128xf32>
    %c0_6 = arith.constant 0 : index
    %c0_7 = arith.constant 0 : index
    %9 = vector.load %arg4[%c0_6, %c0_7] : memref<32x128xbf16, #tpu.memory_space<vmem>>, vector<32x128xbf16>
    %10 = arith.truncf %8 : vector<128x128xf32> to vector<128x128xbf16>
    %cst_8 = arith.constant dense<0.000000e+00> : vector<32x128xf32>
    %11 = tpu.matmul %9, %10, %cst_8 {dimension_numbers = #tpu.dot_dimension_numbers<[1], [0], [0], [1], [0, 0, 1, 1], [], []>} : vector<32x128xbf16>, vector<128x128xbf16>, vector<32x128xf32> -> vector<32x128xf32>
    %c0_9 = arith.constant 0 : index
    %c0_10 = arith.constant 0 : index
    %12 = vector.load %arg5[%c0_9, %c0_10] : memref<32x1xf32, #tpu.memory_space<vmem>>, vector<32x1xf32>
    %13 = vector.broadcast %12 : vector<32x1xf32> to vector<32x128xf32>
    %14 = arith.addf %11, %13 : vector<32x128xf32>
    %cst_11 = arith.constant 0.000000e+00 : f32
    %15 = vector.broadcast %cst_11 : f32 to vector<32x128xf32>
    %16 = arith.maximumf %14, %15 : vector<32x128xf32>
    %c0_12 = arith.constant 0 : index
    %c0_13 = arith.constant 0 : index
    %17 = vector.load %arg6[%c0_12, %c0_13] : memref<32x1xf32, #tpu.memory_space<vmem>>, vector<32x1xf32>
    %18 = vector.broadcast %17 : vector<32x1xf32> to vector<32x128xf32>
    %19 = arith.mulf %16, %18 : vector<32x128xf32>
    %cst_14 = arith.constant dense<0.000000e+00> : vector<128xf32>
    %20 = vector.multi_reduction <add>, %19, %cst_14 [0] : vector<32x128xf32> to vector<128xf32>
    %21 = vector.shape_cast %20 : vector<128xf32> to vector<1x128xf32>
    %c0_15 = arith.constant 0 : index
    %c0_16 = arith.constant 0 : index
    %22 = vector.load %arg7[%c0_15, %c0_16] : memref<1x1xf32, #tpu.memory_space<vmem>>, vector<1x1xf32>
    %23 = vector.broadcast %22 : vector<1x1xf32> to vector<1x128xf32>
    %24 = arith.addf %21, %23 : vector<1x128xf32>
    %c0_17 = arith.constant 0 : index
    %c0_18 = arith.constant 0 : index
    %25 = vector.load %arg8[%c0_17, %c0_18] : memref<1x128xf32, #tpu.memory_space<vmem>>, vector<1x128xf32>
    tpu.vector_store %arg8[%c0_17, %c0_18], %24 {strides = array<i32>} : memref<1x128xf32, #tpu.memory_space<vmem>>, vector<1x128xf32>,
    return
  }
  func.func @transform_0(%arg0: i32) -> (i32, i32) {
    %c0_i32 = arith.constant 0 : i32
    %c0_i32_0 = arith.constant 0 : i32
    return %c0_i32, %arg0 : i32, i32
  }
  func.func @transform_1(%arg0: i32) -> (i32, i32) {
    %c0_i32 = arith.constant 0 : i32
    %c0_i32_0 = arith.constant 0 : i32
    %c0_i32_1 = arith.constant 0 : i32
    return %c0_i32, %c0_i32_0 : i32, i32
  }
  func.func @transform_2(%arg0: i32) -> (i32, i32) {
    %c0_i32 = arith.constant 0 : i32
    %c0_i32_0 = arith.constant 0 : i32
    %c0_i32_1 = arith.constant 0 : i32
    return %c0_i32, %c0_i32_0 : i32, i32
  }
  func.func @transform_3(%arg0: i32) -> (i32, i32) {
    %c0_i32 = arith.constant 0 : i32
    %c0_i32_0 = arith.constant 0 : i32
    %c0_i32_1 = arith.constant 0 : i32
    return %c0_i32, %c0_i32_0 : i32, i32
  }
  func.func @transform_4(%arg0: i32) -> (i32, i32) {
    %c0_i32 = arith.constant 0 : i32
    %c0_i32_0 = arith.constant 0 : i32
    %c0_i32_1 = arith.constant 0 : i32
    return %c0_i32, %c0_i32_0 : i32, i32
  }
  func.func @transform_5(%arg0: i32) -> (i32, i32) {
    %c0_i32 = arith.constant 0 : i32
    %c0_i32_0 = arith.constant 0 : i32
    %c0_i32_1 = arith.constant 0 : i32
    return %c0_i32, %c0_i32_0 : i32, i32
  }
  func.func @transform_6(%arg0: i32) -> (i32, i32) {
    %c0_i32 = arith.constant 0 : i32
    %c0_i32_0 = arith.constant 0 : i32
    %c0_i32_1 = arith.constant 0 : i32
    return %c0_i32, %c0_i32_0 : i32, i32
  }
  func.func @transform_7(%arg0: i32) -> (i32, i32) {
    %c0_i32 = arith.constant 0 : i32
    %c0_i32_0 = arith.constant 0 : i32
    return %c0_i32, %arg0 : i32, i32
  }
}

</mosaic_0001>

<bundles_post_ra>
// kernel: qnet_forward.1
= control target key start
LH: loop header
LB: loop body
LE: loop exit
PB: predicated region body
PF: predicated region fallthrough
CT: control target
= control target key end

     0   :  { %vm208_vm0 = vcmask 1040384   ;;  %vm209_vm1 = vcmask 1041408   ;;  %vm183_vm2 = vcmask 23552   ;;  %v571_v1 = vmov 65535   ;;  %s741_s0 = inlined_call_operand.vmem [shape: f32[3,128], index: 0, kind: input, shape index: {}]   ;;  %s742_s1 = inlined_call_operand.vmem [shape: bf16[128,3], index: 1, kind: input, shape index: {}]   ;;  %s743_s6 = inlined_call_operand.<no memory space> [shape: f32[1,1], index: 6, kind: input, shape index: {}]   ;;  %s744_s2 = inlined_call_operand.vmem [shape: f32[128,1], index: 2, kind: input, shape index: {}]   ;;  %s745_s4 = inlined_call_operand.vmem [shape: f32[32,1], index: 4, kind: input, shape index: {}]   ;;  %s746_s5 = inlined_call_operand.vmem [shape: f32[32,1], index: 5, kind: input, shape index: {}]   ;;  %s747_s3 = inlined_call_operand.vmem [shape: bf16[32,128], index: 3, kind: input, shape index: {}]   ;;  %s748_s7 = inlined_call_operand.vmem [shape: f32[1,128], index: 7, kind: output, shape index: {}]  }
   0x1   :  { %v29_v0 = vld [vmem:[%s741_s0] sm:$0x7]  ;;  %v210_v2 = vsel %vm208_vm0, 4294967295, %v571_v1  ;;  %v12_v4 = vstv %s743_s6  ;;  %v572_v8 = vmov 0   ;;  %v562_v9 = vld [vmem:[%s742_s1 + $0x8] sm:$0xff]   ;;  %v563_v10 = vld [vmem:[%s742_s1 + $0x10] sm:$0xff]  }
   0x2   :  { %v561_v3 = vld [vmem:[%s742_s1] sm:$0xff]   ;;  %v30_v5 = vpack.c.bf16 %v29_v0, %v29_v0  ;;  %v211_v6 = vsel %vm209_vm1, %v210_v2, 0  ;;  %13 = vst [vmem:[#allocation2] sm:$0x1] %v12_v4  ;;  %559 = vset.pattern.permute.xlu0 %v572_v8  ;;  %560 = vset.pattern.permute.xlu1 %v572_v8  ;;  %v61_v11 = vld [vmem:[%s744_s2 + $0x70] sm:$0xff]  ;;  %v62_v13 = vld [vmem:[%s744_s2 + $0x78] sm:$0xff] }
   0x3   :  { %521 = vmatprep.mubr.msk.bf16.mxu0 %vm183_vm2, %v561_v3  ;;  %135 = vperm.xlu0 %559, %v61_v11   ;;  %v59_v12 = vld [vmem:[%s744_s2 + $0x60] sm:$0xff]  ;;  %v60_v14 = vld [vmem:[%s744_s2 + $0x68] sm:$0xff]  ;;  %v564_v15 = vld [vmem:[%s742_s1 + $0x18] sm:$0xff]  }
   0x4   :  { %v213_v7 = vand.u32 %v211_v6, %v30_v5  ;;  %125 = vperm.xlu1 %560, %v59_v12   ;;  %v565_v16 = vld [vmem:[%s742_s1 + $0x20] sm:$0xff]   ;;  %v57_v17 = vld [vmem:[%s744_s2 + $0x50] sm:$0xff]  ;;  %v58_v18 = vld [vmem:[%s744_s2 + $0x58] sm:$0xff] }
   0x5   :  { %v55_v19 = vld [vmem:[%s744_s2 + $0x40] sm:$0xff]  ;;  %v56_v20 = vld [vmem:[%s744_s2 + $0x48] sm:$0xff]  ;;  %v567_v22 = vld [vmem:[%s742_s1 + $0x30] sm:$0xff]  }
   0x6   :  { %519 = vmatprep.subr.bf16.mxu0 %v213_v7  ;;  %v566_v21 = vld [vmem:[%s742_s1 + $0x28] sm:$0xff]   ;;  %v53_v23 = vld [vmem:[%s744_s2 + $0x30] sm:$0xff]  ;;  %v54_v24 = vld [vmem:[%s744_s2 + $0x38] sm:$0xff] }
   0x7   :  { %520 = vmatpush3.bf16.msra.mxu0 %v213_v7  ;;  %140 = vperm.xlu0 %559, %v62_v13   ;;  %v51_v25 = vld [vmem:[%s744_s2 + $0x20] sm:$0xff]  ;;  %v52_v26 = vld [vmem:[%s744_s2 + $0x28] sm:$0xff]  ;;  %v568_v27 = vld [vmem:[%s742_s1 + $0x38] sm:$0xff]  }
   0x8   :  { %130 = vperm.xlu1 %560, %v60_v14   ;;  %v49_v28 = vld [vmem:[%s744_s2 + $0x10] sm:$0xff]  ;;  %v50_v29 = vld [vmem:[%s744_s2 + $0x18] sm:$0xff]  ;;  %v47_v30 = vld [vmem:[%s744_s2] sm:$0xff] }
   0x9   :  { %v48_v31 = vld [vmem:[%s744_s2 + $0x8] sm:$0xff]  ;;  %v340_v32 = vld [vmem:[%s745_s4] sm:$0xff]  ;;  %v342_v34 = vld [vmem:[%s745_s4 + $0x10] sm:$0xff] }
   0xa   :  { %522 = vmatmul.mubr.msk.bf16.vlgmr.msra.gmra.mxu0 %vm183_vm2, %v562_v9  ;;  %v341_v33 = vld [vmem:[%s745_s4 + $0x8] sm:$0xff]  ;;  %v343_v35 = vld [vmem:[%s745_s4 + $0x18] sm:$0xff]  ;;  %v429_v36 = vld [vmem:[%s746_s5] sm:$0xff] }
   0xb   :  { %525 = vmatprep.mubr.msk.bf16.mxu0 %vm183_vm2, %v563_v10  ;;  %115 = vperm.xlu0 %559, %v57_v17   ;;  %v430_v37 = vld [vmem:[%s746_s5 + $0x8] sm:$0xff]  ;;  %v431_v38 = vld [vmem:[%s746_s5 + $0x10] sm:$0xff]  ;;  %v432_v39 = vld [vmem:[%s746_s5 + $0x18] sm:$0xff] }
   0xc   :  { %120 = vperm.xlu1 %560, %v58_v18   ;;  %v466_v40 = vld [vmem:[#allocation2] sm:$0x1] }
   0xd   :  { %v569_v41 = vld [vmem:[%s747_s3] sm:$0xff]  }
   0xe   :  { %553 = vmatprep.mubr.bf16.mxu1 %v569_v41 }
   0xf   :  { %105 = vperm.xlu0 %559, %v55_v19  }
  0x10   :  { %110 = vperm.xlu1 %560, %v56_v20  }
  0x12   :  { %526 = vmatmul.mubr.msk.bf16.gmra.mxu0 %vm183_vm2, %v564_v15 }
  0x13   :  { %529 = vmatprep.mubr.msk.bf16.mxu0 %vm183_vm2, %v565_v16  ;;  %95 = vperm.xlu0 %559, %v53_v23  }
  0x14   :  { %100 = vperm.xlu1 %560, %v54_v24  }
  0x17   :  { %85 = vperm.xlu0 %559, %v51_v25  }
  0x18   :  { %90 = vperm.xlu1 %560, %v52_v26  }
  0x1a   :  { %530 = vmatmul.mubr.msk.bf16.gmra.mxu0 %vm183_vm2, %v566_v21 }
  0x1b   :  { %533 = vmatprep.mubr.msk.bf16.mxu0 %vm183_vm2, %v567_v22  ;;  %75 = vperm.xlu0 %559, %v49_v28  }
  0x1c   :  { %80 = vperm.xlu1 %560, %v50_v29  }
  0x1f   :  { %65 = vperm.xlu0 %559, %v47_v30  }
  0x20   :  { %70 = vperm.xlu1 %560, %v48_v31  }
  0x22   :  { %534 = vmatmul.mubr.msk.bf16.gmra.mxu0 %vm183_vm2, %v568_v27 }
  0x23   :  { %346 = vperm.xlu0 %559, %v340_v32  }
  0x24   :  { %351 = vperm.xlu1 %560, %v341_v33  }
  0x27   :  { %356 = vperm.xlu0 %559, %v342_v34  }
  0x28   :  { %361 = vperm.xlu1 %560, %v343_v35  }
  0x2b   :  { %435 = vperm.xlu0 %559, %v429_v36  }
  0x2c   :  { %440 = vperm.xlu1 %560, %v430_v37  }
  0x2f   :  { %445 = vperm.xlu0 %559, %v431_v38  }
  0x30   :  { %450 = vperm.xlu1 %560, %v432_v39  }
  0x33   :  { %469 = vperm.xlu0 %559, %v466_v40  }
  0x7e   :  { %v136_v47 = vpop.permute.xlu0 %135 }
  0x7f   :  { %v126_v45 = vpop.permute.xlu1 %125 }
  0x82   :  { %v141_v52 = vpop.permute.xlu0 %140 }
  0x83   :  { %v131_v50 = vpop.permute.xlu1 %130 }
  0x86   :  { %v116_v57 = vpop.permute.xlu0 %115 }
  0x87   :  { %v121_v55 = vpop.permute.xlu1 %120 }
  0x8a   :  { %v106_v62 = vpop.permute.xlu0 %105 }
  0x8b   :  { %v111_v60 = vpop.permute.xlu1 %110 }
  0x8e   :  { %v96_v10 = vpop.permute.xlu0 %95 }
  0x8f   :  { %v101_v4 = vpop.permute.xlu1 %100 }
  0x92   :  { %v86_v21 = vpop.permute.xlu0 %85 }
  0x93   :  { %v91_v18 = vpop.permute.xlu1 %90 }
  0x96   :  { %v76_v31 = vpop.permute.xlu0 %75 }
  0x97   :  { %v81_v27 = vpop.permute.xlu1 %80 }
  0x9a   :  { %v66_v40 = vpop.permute.xlu0 %65 }
  0x9b   :  { %v71_v37 = vpop.permute.xlu1 %70 }
  0xca   :  { %v726_v42 = vpop.f32.mrf.mxu0 }
  0xcb   :  { %v258_v38 = vadd.f32 %v726_v42, %v76_v31  ;;  %v570_v42 = vld [vmem:[%s747_s3 + $0x8] sm:$0xff]  }
  0xcc   :  { %v728_v43 = vpop.f32.mrf.mxu0 }
  0xce   :  { %v524_v44 = vpop.f32.mrf.mxu0 }
  0xcf   :  { %v261_v34 = vadd.f32 %v524_v44, %v81_v27 }
  0xd0   :  { %v730_v46 = vpop.f32.mrf.mxu0 }
  0xd1   :  { %v315_v41 = vmax.f32 %v261_v34, 0.0 }
  0xd2   :  { %v527_v48 = vpop.f32.mrf.mxu0 }
  0xd3   :  { %v274_v25 = vadd.f32 %v527_v48, %v96_v10  ;;  %v314_v48 = vmax.f32 %v258_v38, 0.0 }
  0xd4   :  { %v265_v49 = vpop.f32.mrf.mxu0 }
  0xd5   :  { %v318_v32 = vmax.f32 %v274_v25, 0.0  ;;  %v266_v33 = vadd.f32 %v265_v49, %v86_v21  ;;  %v333_v49 = vpack.c.bf16 %v315_v41, %v314_v48 }
  0xd6   :  { %v528_v51 = vpop.f32.mrf.mxu0 }
  0xd7   :  { %v277_v22 = vadd.f32 %v528_v51, %v101_v4  ;;  %v316_v39 = vmax.f32 %v266_v33, 0.0 }
  0xd8   :  { %v268_v53 = vpop.f32.mrf.mxu0 }
  0xd9   :  { %v319_v28 = vmax.f32 %v277_v22, 0.0  ;;  %v269_v29 = vadd.f32 %v268_v53, %v91_v18  ;;  %v352_v53 = vpop.permute.xlu1 %351 }
  0xda   :  { %v531_v54 = vpop.f32.mrf.mxu0 }
  0xdb   :  { %v290_v11 = vadd.f32 %v531_v54, %v116_v57  ;;  %v335_v35 = vpack.c.bf16 %v319_v28, %v318_v32  ;;  %v317_v36 = vmax.f32 %v269_v29, 0.0 }
  0xdc   :  { %v281_v56 = vpop.f32.mrf.mxu0 }
  0xdd   :  { %v322_v19 = vmax.f32 %v290_v11, 0.0  ;;  %v282_v20 = vadd.f32 %v281_v56, %v106_v62 }
  0xde   :  { %v532_v58 = vpop.f32.mrf.mxu0 }
  0xdf   :  { %v293_v6 = vadd.f32 %v532_v58, %v121_v55  ;;  %v320_v26 = vmax.f32 %v282_v20, 0.0 }
  0xe0   :  { %v284_v59 = vpop.f32.mrf.mxu0 }
  0xe1   :  { %v323_v15 = vmax.f32 %v293_v6, 0.0  ;;  %v285_v16 = vadd.f32 %v284_v59, %v111_v60 }
  0xe2   :  { %v535_v61 = vpop.f32.mrf.mxu0 }
  0xe3   :  { %v306_v0 = vadd.f32 %v535_v61, %v136_v47  ;;  %v337_v23 = vpack.c.bf16 %v323_v15, %v322_v19  ;;  %v321_v24 = vmax.f32 %v285_v16, 0.0  ;;  %v334_v47 = vpack.c.bf16 %v317_v36, %v316_v39 }
  0xe4   :  { %v297_v63 = vpop.f32.mrf.mxu0 }
  0xe5   :  { %v298_v2 = vadd.f32 %v297_v63, %v126_v45  ;;  %v326_v7 = vmax.f32 %v306_v0, 0.0  ;;  %v336_v30 = vpack.c.bf16 %v321_v24, %v320_v26  ;;  %v253_v45 = vadd.f32 %v730_v46, %v71_v37  ;;  %v347_v46 = vpop.permute.xlu0 %346 }
  0xe6   :  { %v536_v1 = vpop.f32.mrf.mxu0 }
  0xe7   :  { %v309_v3 = vadd.f32 %v536_v1, %v141_v52  ;;  %v324_v12 = vmax.f32 %v298_v2, 0.0  ;;  %v313_v44 = vmax.f32 %v253_v45, 0.0 }
  0xe8   :  { %v300_v5 = vpop.f32.mrf.mxu0 }
  0xe9   :  { %v327_v8 = vmax.f32 %v309_v3, 0.0  ;;  %v301_v9 = vadd.f32 %v300_v5, %v131_v50  ;;  %v250_v50 = vadd.f32 %v728_v43, %v66_v40  ;;  %v357_v54 = vpop.permute.xlu0 %356  ;;  %v362_v43 = vpop.permute.xlu1 %361 }
  0xeb   :  { %v325_v13 = vmax.f32 %v301_v9, 0.0  ;;  %v339_v14 = vpack.c.bf16 %v327_v8, %v326_v7  ;;  %v312_v51 = vmax.f32 %v250_v50, 0.0 }
  0xed   :  { %v338_v17 = vpack.c.bf16 %v325_v13, %v324_v12  ;;  %537 = vmatprep.subr.bf16.mxu1 %v339_v14  ;;  %v332_v52 = vpack.c.bf16 %v313_v44, %v312_v51  ;;  %v436_v60 = vpop.permute.xlu0 %435  ;;  %v441_v1 = vpop.permute.xlu1 %440  ;;  %v472_v13 = vlaneseq }
  0xee   :  { %538 = vmatpush3.bf16.msra.mxu1 %v339_v14 }
  0xef   :  { %539 = vmatprep.subr.bf16.mxu1 %v338_v17  ;;  %v473_v16 = vshrl.u32 %v472_v13, 7 }
  0xf1   :  { %v446_v7 = vpop.permute.xlu0 %445  ;;  %v451_v10 = vpop.permute.xlu1 %450  ;;  %v474_v19 = vsub.s32 0, %v473_v16 }
  0xf2   :  { %540 = vmatpush3.bf16.msra.mxu1 %v338_v17 }
  0xf3   :  { %541 = vmatprep.subr.bf16.mxu1 %v337_v23 }
  0xf5   :  { %v470_v21 = vpop.permute.xlu0 %469 }
  0xf6   :  { %542 = vmatpush3.bf16.msra.mxu1 %v337_v23  ;;  %v475_v23 = vrot.slane %v470_v21, %v474_v19 }
  0xf7   :  { %543 = vmatprep.subr.bf16.mxu1 %v336_v30 }
  0xfa   :  { %544 = vmatpush3.bf16.msra.mxu1 %v336_v30 }
  0xfb   :  { %545 = vmatprep.subr.bf16.mxu1 %v335_v35 }
  0xfe   :  { %546 = vmatpush3.bf16.msra.mxu1 %v335_v35 }
  0xff   :  { %547 = vmatprep.subr.bf16.mxu1 %v334_v47 }
 0x102   :  { %548 = vmatpush3.bf16.msra.mxu1 %v334_v47 }
 0x103   :  { %549 = vmatprep.subr.bf16.mxu1 %v333_v49 }
 0x106   :  { %550 = vmatpush3.bf16.msra.mxu1 %v333_v49 }
 0x107   :  { %551 = vmatprep.subr.bf16.mxu1 %v332_v52 }
 0x10a   :  { %552 = vmatpush3.bf16.msra.mxu1 %v332_v52 }
 0x10d   :  { %554 = vmatmul.mubr.bf16.vlgmr.msra.gmra.mxu1 %v570_v42 }
 0x1cd   :  { %v555_v55 = vpop.f32.mrf.mxu1 }
 0x1ce   :  { %v419_v59 = vadd.f32 %v555_v55, %v357_v54 }
 0x1cf   :  { %v410_v56 = vpop.f32.mrf.mxu1 }
 0x1d0   :  { %v411_v57 = vadd.f32 %v410_v56, %v347_v46  ;;  %v427_v2 = vmax.f32 %v419_v59, 0.0 }
 0x1d1   :  { %v556_v58 = vpop.f32.mrf.mxu1 }
 0x1d2   :  { %v425_v62 = vmax.f32 %v411_v57, 0.0  ;;  %v422_v63 = vadd.f32 %v556_v58, %v362_v43  ;;  %v455_v8 = vmul.f32 %v446_v7, %v427_v2 }
 0x1d3   :  { %v413_v61 = vpop.f32.mrf.mxu1 }
 0x1d4   :  { %v414_v0 = vadd.f32 %v413_v61, %v352_v53  ;;  %v453_v4 = vmul.f32 %v436_v60, %v425_v62  ;;  %v428_v5 = vmax.f32 %v422_v63, 0.0 }
 0x1d6   :  { %v426_v3 = vmax.f32 %v414_v0, 0.0  ;;  %v456_v11 = vmul.f32 %v451_v10, %v428_v5 }
 0x1d8   :  { %v454_v6 = vmul.f32 %v441_v1, %v426_v3 }
 0x1da   :  { %v457_v9 = vadd.f32 %v454_v6, %v453_v4 }
 0x1dc   :  { %v458_v12 = vadd.f32 %v457_v9, %v455_v8 }
 0x1de   :  { %v459_v14 = vadd.f32 %v458_v12, %v456_v11 }
 0x1e0   :  { %v460_v15 = vrot.slane %v459_v14, 4 }
 0x1e2   :  { %v461_v17 = vadd.f32 %v460_v15, %v459_v14 }
 0x1e4   :  { %v462_v18 = vrot.slane %v461_v17, 2 }
 0x1e6   :  { %v463_v20 = vadd.f32 %v462_v18, %v461_v17 }
 0x1e8   :  { %v464_v22 = vrot.slane %v463_v20, 1 }
 0x1ea   :  { %v465_v24 = vadd.f32 %v464_v22, %v463_v20 }
 0x1ec   :  { %v476_v25 = vadd.f32 %v475_v23, %v465_v24 }
 0x1ee   :  { %477 = vst [vmem:[%s748_s7] sm:$0x1] %v476_v25 }

</bundles_post_ra>
